<compile_context>
chip_gen: v5e
topology: v5e:2x2
jax: 0.10.0
libtpu: 0.0.40
codegen_flags: <defaults>
</compile_context>

<pallas_src>
import math

import jax
import jax.numpy as jnp
from jax.experimental import pallas as pl
from jax.experimental.pallas import tpu as pltpu


def _pe_add_kernel(x_ref, pe_ref, o_ref):
    # x_ref: (TS, B, D)   pe_ref: (TS, D)  -> broadcast add over batch (VPU).
    o_ref[...] = x_ref[...] + pe_ref[...][:, None, :]


def make_positional_encoding(d_model: int, max_len: int = 5000,
                             dtype=jnp.float32) -> jnp.ndarray:
    """Buffer setup matching the PyTorch __init__, stored dense as (max_len, d_model).

    Build it once in the activation dtype so the forward pass never re-casts.
    """
    position = jnp.arange(0, max_len, dtype=jnp.float32)[:, None]            # (L, 1)
    div_term = jnp.exp(jnp.arange(0, d_model, 2, dtype=jnp.float32)
                       * (-math.log(10000.0) / d_model))                     # (ceil(D/2),)
    pe = jnp.zeros((max_len, d_model), dtype=jnp.float32)
    pe = pe.at[:, 0::2].set(jnp.sin(position * div_term))
    # Guard odd d_model (the PyTorch original raises a shape error there).
    pe = pe.at[:, 1::2].set(jnp.cos(position * div_term[: d_model // 2]))
    return pe.astype(dtype)                                                  # (L, D)


def _sublane_multiple(itemsize: int) -> int:
    # 32-bit sublane packing: f32 -> 8, bf16 -> 16, int8 -> 32.
    return max(8, 8 * (4 // max(itemsize, 1)))


def _vmem_capacity_bytes() -> int:
    try:
        return int(pltpu.get_tpu_info().vmem_capacity_bytes)
    except Exception:
        return 64 * 1024 * 1024   # v7x-conservative fallback


def _padded_row_bytes(B: int, D: int, itemsize: int) -> tuple[int, int]:
    """Padded VMEM bytes per seq row for an x/out tile and for a pe tile."""
    sub = _sublane_multiple(itemsize)
    pad_b = -(-B // sub) * sub
    pad_d = -(-D // 128) * 128
    return pad_b * pad_d * itemsize, pad_d * itemsize


def _choose_block_seq(S: int, B: int, D: int, itemsize: int) -> int:
    x_row, pe_row = _padded_row_bytes(B, D, itemsize)
    target_tile = 8 * 1024 * 1024                      # bandwidth sweet spot
    budget = min(max(_vmem_capacity_bytes() // 3, 16 * 1024 * 1024),
                 48 * 1024 * 1024)                     # double-buffered resident cap
    ts = min(S,
             max(1, target_tile // x_row),
             max(1, budget // (2 * (2 * x_row + pe_row))))
    # Keep >= ~4 grid steps so step i's writeback overlaps step i+1's prefetch.
    ts = min(ts, -(-S // 4))
    # The pe block's second-to-last dim is the seq axis: keep it sublane-aligned.
    if S >= 8:
        ts = min(S, max(8, (ts // 8) * 8))
    else:
        ts = S
    return int(max(1, ts))


def positional_encoding_forward(x: jnp.ndarray, pe: jnp.ndarray,
                                *, block_seq: int | None = None) -> jnp.ndarray:
    """x: (S, B, D); pe: (max_len, D) (a (max_len, 1, D) buffer is squeezed)."""
    S, B, D = x.shape
    if pe.ndim == 3:
        pe = pe.reshape(pe.shape[0], pe.shape[-1])
    assert pe.shape[0] >= S and pe.shape[1] == D
    if pe.dtype != x.dtype:
        # Prefer building pe in the activation dtype; this cast is a fallback.
        pe = pe.astype(x.dtype)
    itemsize = jnp.dtype(x.dtype).itemsize

    ts = block_seq if block_seq is not None else _choose_block_seq(S, B, D, itemsize)
    ts = int(max(1, min(ts, S)))
    grid = (pl.cdiv(S, ts),)

    # Double-buffered resident VMEM (padded tile sizes): x-in + pe-in + out.
    x_row, pe_row = _padded_row_bytes(B, D, itemsize)
    resident = 2 * ts * (2 * x_row + pe_row)
    vmem_limit = min(max(int(resident * 1.5), 16 * 1024 * 1024),
                     _vmem_capacity_bytes() - 4 * 1024 * 1024)

    return pl.pallas_call(
        _pe_add_kernel,
        out_shape=jax.ShapeDtypeStruct((S, B, D), x.dtype),
        grid_spec=pltpu.PrefetchScalarGridSpec(
            num_scalar_prefetch=0,
            grid=grid,
            in_specs=[
                pl.BlockSpec((ts, B, D), lambda s: (s, 0, 0)),
                pl.BlockSpec((ts, D), lambda s: (s, 0)),
            ],
            out_specs=pl.BlockSpec((ts, B, D), lambda s: (s, 0, 0)),
        ),
        compiler_params=pltpu.CompilerParams(
            dimension_semantics=("parallel",),
            vmem_limit_bytes=int(vmem_limit),
        ),
        cost_estimate=pl.CostEstimate(
            flops=S * B * D,
            bytes_accessed=(2 * S * B * D + S * D) * itemsize,
            transcendentals=0,
        ),
    )(x, pe)


if __name__ == "__main__":
    # Shapes consistent with the module: seq=8, batch=2, d_model=32.
    B, D = 2, 32
    max_len = 64  # small buffer for the demo; semantics unchanged (only pe[:S] used)

    key = jax.random.PRNGKey(0)
    k1, k2 = jax.random.split(key)
    pe = make_positional_encoding(D, max_len=max_len, dtype=jnp.float32)

    # 1) Demo shape (single-tile grid path).
    S1 = 8
    x1 = jax.random.normal(k1, (S1, B, D), dtype=jnp.float32)
    ref1 = x1 + pe[:S1][:, None, :]
    out1 = jax.block_until_ready(positional_encoding_forward(x1, pe))
    assert out1.shape == (S1, B, D)
    assert jnp.allclose(out1, ref1, atol=1e-6, rtol=1e-6)

    # 2) Longer, non-multiple-of-8 sequence: exercises the multi-step pipelined
    #    grid and the masked partial last block used at realistic lengths.
    S2 = 37
    x2 = jax.random.normal(k2, (S2, B, D), dtype=jnp.float32)
    ref2 = x2 + pe[:S2][:, None, :]
    out2 = jax.block_until_ready(positional_encoding_forward(x2, pe))
    assert out2.shape == (S2, B, D)
    assert jnp.allclose(out2, ref2, atol=1e-6, rtol=1e-6)

    print("KERNEL_OK")
</pallas_src>

<mosaic_0001>
module attributes {stable_mosaic.version = 11 : i64} {
  func.func @_pe_add_kernel(%arg0: i32, %arg1: memref<8x2x32xf32, #tpu.memory_space<vmem>>, %arg2: memref<8x32xf32, #tpu.memory_space<vmem>>, %arg3: memref<8x2x32xf32, #tpu.memory_space<vmem>>) attributes {dimension_semantics = [#tpu.dimension_semantics<parallel>], iteration_bounds = array<i64: 1>, scalar_prefetch = 0 : i64, scratch_operands = 0 : i64, tpu.core_type = #tpu.core_type<tc>, window_params = [{transform_indices = @transform_0, window_bounds = array<i64: 8, 2, 32>}, {transform_indices = @transform_1, window_bounds = array<i64: 8, 32>}, {transform_indices = @transform_2, window_bounds = array<i64: 8, 2, 32>}]} {
    %c0 = arith.constant 0 : index
    %c0_0 = arith.constant 0 : index
    %c0_1 = arith.constant 0 : index
    %0 = vector.load %arg1[%c0, %c0_0, %c0_1] : memref<8x2x32xf32, #tpu.memory_space<vmem>>, vector<8x2x32xf32>
    %c0_2 = arith.constant 0 : index
    %c0_3 = arith.constant 0 : index
    %1 = vector.load %arg2[%c0_2, %c0_3] : memref<8x32xf32, #tpu.memory_space<vmem>>, vector<8x32xf32>
    %2 = vector.shape_cast %1 : vector<8x32xf32> to vector<8x1x32xf32>
    %3 = vector.broadcast %2 : vector<8x1x32xf32> to vector<8x2x32xf32>
    %4 = arith.addf %0, %3 : vector<8x2x32xf32>
    %c0_4 = arith.constant 0 : index
    %c0_5 = arith.constant 0 : index
    %c0_6 = arith.constant 0 : index
    %5 = vector.load %arg3[%c0_4, %c0_5, %c0_6] : memref<8x2x32xf32, #tpu.memory_space<vmem>>, vector<8x2x32xf32>
    tpu.vector_store %arg3[%c0_4, %c0_5, %c0_6], %4 {strides = array<i32>} : memref<8x2x32xf32, #tpu.memory_space<vmem>>, vector<8x2x32xf32>,
    return
  }
  func.func @transform_0(%arg0: i32) -> (i32, i32, i32) {
    %c0_i32 = arith.constant 0 : i32
    %c0_i32_0 = arith.constant 0 : i32
    %c0_i32_1 = arith.constant 0 : i32
    return %arg0, %c0_i32, %c0_i32_0 : i32, i32, i32
  }
  func.func @transform_1(%arg0: i32) -> (i32, i32) {
    %c0_i32 = arith.constant 0 : i32
    %c0_i32_0 = arith.constant 0 : i32
    return %arg0, %c0_i32 : i32, i32
  }
  func.func @transform_2(%arg0: i32) -> (i32, i32, i32) {
    %c0_i32 = arith.constant 0 : i32
    %c0_i32_0 = arith.constant 0 : i32
    %c0_i32_1 = arith.constant 0 : i32
    return %arg0, %c0_i32, %c0_i32_0 : i32, i32, i32
  }
}

</mosaic_0001>

<bundles_post_ra>
// kernel: tpu_custom_call.1
= control target key start
LH: loop header
LB: loop body
LE: loop exit
PB: predicated region body
PF: predicated region fallthrough
CT: control target
= control target key end

     0   :  { %vm53_vm0 = vcmask 254976   ;;  %s165_s0 = inlined_call_operand.vmem [shape: f32[8,2,32], index: 0, kind: input, shape index: {}]   ;;  %s166_s1 = inlined_call_operand.vmem [shape: f32[64,32], index: 1, kind: input, shape index: {}]   ;;  %s167_s2 = inlined_call_operand.hbm [shape: f32[8,2,32], index: 2, kind: output, shape index: {}]  }
   0x1   :  { %v12_v0 = vld [vmem:[%s165_s0] sm:$0x3]  ;;  %v13_v2 = vld [vmem:[%s165_s0 + $0x2] sm:$0x3]  ;;  %v14_v5 = vld [vmem:[%s165_s0 + $0x4] sm:$0x3] }
   0x2   :  { %v20_v1 = vld [vmem:[%s166_s1] sm:$0xff]  ;;  %v16_v9 = vld [vmem:[%s165_s0 + $0x8] sm:$0x3]  ;;  %v17_v16 = vld [vmem:[%s165_s0 + $0xa] sm:$0x3] }
   0x3   :  { %v29_v3 = vperm.slane %v20_v1, 0  ;;  %v22_v4 = vrot.slane %v20_v1, 1  ;;  %v23_v6 = vrot.slane %v20_v1, 2  ;;  %v24_v7 = vrot.slane %v20_v1, 3  ;;  %v15_v8 = vld [vmem:[%s165_s0 + $0x6] sm:$0x3] }
   0x4   :  { %v25_v10 = vrot.slane %v20_v1, 4  ;;  %v26_v11 = vrot.slane %v20_v1, 5  ;;  %v27_v19 = vrot.slane %v20_v1, 6  ;;  %v28_v20 = vrot.slane %v20_v1, 7  ;;  %v18_v24 = vld [vmem:[%s165_s0 + $0xc] sm:$0x3] }
   0x5   :  { %v45_v12 = vadd.f32 %v29_v3, %v12_v0  ;;  %v30_v13 = vperm.slane %v22_v4, 0  ;;  %v31_v14 = vperm.slane %v23_v6, 0  ;;  %v32_v15 = vperm.slane %v24_v7, 0 }
   0x6   :  { %v33_v17 = vperm.slane %v25_v10, 0  ;;  %v34_v18 = vperm.slane %v26_v11, 0 }
   0x7   :  { %54 = vst.msk [vmem:[#allocation2] sm:$0x3] %vm53_vm0, %v45_v12  ;;  %v46_v21 = vadd.f32 %v30_v13, %v13_v2  ;;  %v47_v22 = vadd.f32 %v31_v14, %v14_v5  ;;  %v48_v23 = vadd.f32 %v32_v15, %v15_v8 }
   0x8   :  { %7 = vsyncpa [#allocation3], 0  ;;  %v49_v25 = vadd.f32 %v33_v17, %v16_v9  ;;  %v35_v26 = vperm.slane %v27_v19, 0  ;;  %v19_v27 = vld [vmem:[%s165_s0 + $0xe] sm:$0x3]  ;;  %v36_v28 = vperm.slane %v28_v20, 0  ;;  %v50_v29 = vadd.f32 %v34_v18, %v17_v16 }
   0x9   :  { %55 = vst.msk [vmem:[#allocation2 + $0x2] sm:$0x3] %vm53_vm0, %v46_v21  ;;  %s109_s26 = smov [#allocation2]   ;;  %s68_s30 = sshll.u32 %s167_s2, 4  ;;  %s69_s30 = int_to_ptr.hbm [resolvable:$true] %s68_s30 }
   0xa   :  { %s66_s27 = sshll.u32 %s109_s26, 4  ;;  %56 = vst.msk [vmem:[#allocation2 + $0x4] sm:$0x3] %vm53_vm0, %v47_v22  ;;  %v51_v30 = vadd.f32 %v35_v26, %v18_v24  ;;  %v52_v31 = vadd.f32 %v36_v28, %v19_v27  ;;  %s110_s0 = smov 32   ;;  %s67_s27 = int_to_ptr.vmem [resolvable:$true] %s66_s27 }
   0xb   :  { %57 = vst.msk [vmem:[#allocation2 + $0x6] sm:$0x3] %vm53_vm0, %v48_v23  ;;  %s111_s3 = smov 2  }
   0xc   :  { %58 = vst.msk [vmem:[#allocation2 + $0x8] sm:$0x3] %vm53_vm0, %v49_v25 }
   0xd   :  { %59 = vst.msk [vmem:[#allocation2 + $0xa] sm:$0x3] %vm53_vm0, %v50_v29 }
   0xe   :  { %60 = vst.msk [vmem:[#allocation2 + $0xc] sm:$0x3] %vm53_vm0, %v51_v30 }
   0xf   :  { %61 = vst.msk [vmem:[#allocation2 + $0xe] sm:$0x3] %vm53_vm0, %v52_v31 }
  0x10   :  { %74 = dma.vmem_to_hbm [thread:$0]  %s67_s27, 256, %s69_s30, [#allocation3], %s110_s0, %s110_s0, %s111_s3  }
  0x11   :  { %107 = dma.done.wait [#allocation3], 256  }
  0x12   :  { %108 = vsyncadd [#allocation3], 4294967040 }
  0x13   :  { %79 = vsyncpa [#allocation3], 1 }

</bundles_post_ra>
